<compile_context>
chip_gen: v5e
topology: v5e:2x2
jax: 0.10.0
libtpu: 0.0.40
codegen_flags: <defaults>
</compile_context>

<pallas_src>
import math

import jax
import jax.numpy as jnp
from jax.experimental import pallas as pl
from jax.experimental.pallas import tpu as pltpu


_EPS = 1e-10


# ---------------------------------------------------------------------------
# Hardware-aware sizing helpers
# ---------------------------------------------------------------------------
def _tpu_generation():
    """Best-effort TPU generation sniff (affects VMEM budget / megacore only)."""
    try:
        kind = jax.devices()[0].device_kind.lower()
    except Exception:
        kind = ""
    for g in (7, 6, 5):
        if f"v{g}" in kind:
            return g
    return 6  # conservative default


def _vmem_limit_bytes(gen):
    # v7x: 64 MiB physical per TensorCore -> keep the scoped limit conservative.
    # v5e/v6e: 128 MiB physical -> allow a larger scoped window.
    return (32 << 20) if gen >= 7 else (64 << 20)


def _pick_batch_tile(b, d_pad, gen, vmem_limit, sublane=8):
    """Largest sublane-aligned batch tile dividing b whose working set fits VMEM.

    Working-set model: ~10 live (bt, d_pad) f32 slabs (double-buffered in/out
    plus x, the stacked [x, x^2] operand, the broadcast-back slab and the
    output temporary).  On v7x (2 TensorCores) prefer an even number of grid
    steps, ideally >= 4, so both cores get pipelined work; on single-TC chips
    (v5e/v6e) take the biggest tile that fits — fewer, larger steps amortize
    the ~0.35 us per-grid-step overhead.
    """
    live_factor = 10
    budget = int(vmem_limit * 0.6)

    def fits(bt):
        return live_factor * bt * d_pad * 4 <= budget

    cands = [bt for bt in range(sublane, b + 1, sublane) if b % bt == 0]
    if not cands:
        cands = [b]          # full-dim block: legal (masked sublanes), perf-only
    fitting = [bt for bt in cands if fits(bt)] or [min(cands)]

    if gen >= 7:             # megacore: want an even step count, ideally >= 4
        for good in (lambda s: s % 2 == 0 and s >= 4,
                     lambda s: s % 2 == 0,
                     lambda s: True):
            ok = [bt for bt in fitting if good(b // bt)]
            if ok:
                return max(ok)
    return max(fitting)


# ---------------------------------------------------------------------------
# Kernel factory (signature depends on which learned parameters exist)
# ---------------------------------------------------------------------------
def _make_kernel(n_per_ch, running_std, running_mean, std_scalar):
    inv_n = 1.0 / n_per_ch
    inv_nm1 = 1.0 / (n_per_ch - 1)

    def body(x_ref, seg_ref, std_ref, mean_ref, o_ref):
        bt = x_ref.shape[0]
        x = x_ref[...].astype(jnp.float32)           # (BT, Dp) lane-dense
        seg = seg_ref[...]                           # (Dp, Cp) resident 0/1 map

        # --- MXU pass 1: per-(row, channel) sum and sum-of-squares ----------
        stacked = jnp.concatenate([x, x * x], axis=0)                 # (2BT, Dp)
        sums = jnp.dot(stacked, seg, preferred_element_type=jnp.float32)
        s1, s2 = sums[:bt], sums[bt:]                                 # (BT, Cp)

        mean_c = s1 * inv_n
        # One-pass unbiased variance (ddof=1), clamped against cancellation.
        var_c = jnp.maximum((s2 - mean_c * s1) * inv_nm1, 0.0)
        scale_c = 1.0 / (jnp.sqrt(var_c) + _EPS)     # exact recip (1e-5 tol)
        shift_c = -mean_c * scale_c

        # --- MXU pass 2: broadcast per-channel affine back to full width ----
        coeffs = jnp.concatenate([scale_c, shift_c], axis=0)          # (2BT, Cp)
        full = jax.lax.dot_general(
            coeffs, seg,
            dimension_numbers=(((1,), (1,)), ((), ())),               # (2BT, Dp)
            preferred_element_type=jnp.float32)

        out = x * full[:bt] + full[bt:]
        if running_std:
            out = out * std_ref[...]                                  # (1, Dp)
        else:
            out = out * std_scalar
        if running_mean:
            out = out + mean_ref[...]
        o_ref[...] = out.astype(o_ref.dtype)

    if running_std and running_mean:
        def kernel(x_ref, seg_ref, std_ref, mean_ref, o_ref):
            body(x_ref, seg_ref, std_ref, mean_ref, o_ref)
    elif running_std:
        def kernel(x_ref, seg_ref, std_ref, o_ref):
            body(x_ref, seg_ref, std_ref, None, o_ref)
    elif running_mean:
        def kernel(x_ref, seg_ref, mean_ref, o_ref):
            body(x_ref, seg_ref, None, mean_ref, o_ref)
    else:
        def kernel(x_ref, seg_ref, o_ref):
            body(x_ref, seg_ref, None, None, o_ref)
    return kernel


# ---------------------------------------------------------------------------
# Wrapper
# ---------------------------------------------------------------------------
def filter_norm_forward(x, std_param=None, mean_param=None, *, in_channels,
                        kernel_size, running_std, running_mean, gain=1.0,
                        out_dtype=None):
    """x: (B, C, H, W). Returns (B, C*H*W), matching FilterNorm.forward."""
    b = x.shape[0]
    c = in_channels
    d = math.prod(x.shape[1:])
    assert d % c == 0
    n = d // c
    assert n >= 2, "unbiased std (ddof=1) needs >= 2 elements per channel"
    if running_std or running_mean:
        assert d == c * kernel_size ** 2, (
            "learned std/mean only broadcast when h*w == kernel_size**2")
    std_scalar = float(gain) / float(kernel_size)
    out_dtype = x.dtype if out_dtype is None else out_dtype

    # Lane-dense padded width: pad lanes map to whole fake channels, so the
    # real per-channel statistics stay exact and the pad output is 0.
    d_pad = ((d + 127) // 128) * 128
    c_pad = -(-d_pad // n)

    x_flat = x.reshape(b, d)                         # contiguous: free reshape
    if d_pad != d:
        x_flat = jnp.pad(x_flat, ((0, 0), (0, d_pad - d)))

    # 0/1 channel-selection matrix, built once on the host, VMEM-resident.
    lane = jnp.arange(d_pad, dtype=jnp.int32)
    seg = (lane[:, None] // n ==
           jnp.arange(c_pad, dtype=jnp.int32)[None, :]).astype(jnp.float32)

    gen = _tpu_generation()
    vmem_limit = _vmem_limit_bytes(gen)
    sublane = 16 if jnp.dtype(x.dtype).itemsize == 2 else 8
    bt = _pick_batch_tile(b, d_pad, gen, vmem_limit, sublane=sublane)
    grid = (pl.cdiv(b, bt),)

    in_specs = [pl.BlockSpec((bt, d_pad), lambda i: (i, 0)),
                pl.BlockSpec((d_pad, c_pad), lambda i: (0, 0))]
    args = [x_flat, seg]
    if running_std:
        std_row = jnp.asarray(std_param, jnp.float32).reshape(1, d)
        if d_pad != d:
            std_row = jnp.pad(std_row, ((0, 0), (0, d_pad - d)))
        in_specs.append(pl.BlockSpec((1, d_pad), lambda i: (0, 0)))
        args.append(std_row)
    if running_mean:
        mean_row = jnp.asarray(mean_param, jnp.float32).reshape(1, d)
        if d_pad != d:
            mean_row = jnp.pad(mean_row, ((0, 0), (0, d_pad - d)))
        in_specs.append(pl.BlockSpec((1, d_pad), lambda i: (0, 0)))
        args.append(mean_row)

    kern = _make_kernel(n, running_std, running_mean, std_scalar)

    out = pl.pallas_call(
        kern,
        out_shape=jax.ShapeDtypeStruct((b, d_pad), out_dtype),
        grid=grid,
        in_specs=in_specs,
        out_specs=pl.BlockSpec((bt, d_pad), lambda i: (i, 0)),
        compiler_params=pltpu.CompilerParams(
            dimension_semantics=("parallel",),
            vmem_limit_bytes=vmem_limit,
        ),
    )(*args)

    if d_pad != d:
        out = out[:, :d]
    return out


# ---------------------------------------------------------------------------
# Pure-JAX reference (mirrors the PyTorch forward exactly)
# ---------------------------------------------------------------------------
def reference_forward(x, std_param=None, mean_param=None, *, in_channels,
                      kernel_size, running_std, running_mean, gain=1.0):
    b = x.shape[0]
    c = in_channels
    xr = x.astype(jnp.float32).reshape(b, c, -1)
    m = jnp.mean(xr, axis=2, keepdims=True)
    s = jnp.std(xr, axis=2, ddof=1).reshape(b, c, 1)   # torch default: unbiased
    xn = (xr - m) / (s + 1e-10)
    xf = xn.reshape(b, -1)
    if running_std:
        xf = xf * jnp.asarray(std_param, jnp.float32)[None, :]
    else:
        xf = xf * (gain / kernel_size)
    if running_mean:
        xf = xf + jnp.asarray(mean_param, jnp.float32)[None, :]
    return xf


if __name__ == "__main__":
    key = jax.random.PRNGKey(0)
    kx, ks, km, kx2, ks2, km2 = jax.random.split(key, 6)

    # Case A: D = C*K*K = 256 (already lane-dense), both parameter configs.
    B, C, K = 16, 16, 4
    GAIN = 1.0                                  # calculate_gain('linear') == 1.0
    x = jax.random.normal(kx, (B, C, K, K), jnp.float32)
    std_p = jax.random.normal(ks, (C * K * K,), jnp.float32) * (GAIN / K)
    mean_p = jax.random.normal(km, (C * K * K,), jnp.float32)

    for rs, rm in ((True, True), (False, False)):
        out = jax.block_until_ready(filter_norm_forward(
            x, std_p, mean_p, in_channels=C, kernel_size=K,
            running_std=rs, running_mean=rm, gain=GAIN))
        ref = reference_forward(x, std_p, mean_p, in_channels=C, kernel_size=K,
                                running_std=rs, running_mean=rm, gain=GAIN)
        assert out.shape == (B, C * K * K), out.shape
        err = float(jnp.max(jnp.abs(out - ref)))
        assert jnp.allclose(out, ref, atol=1e-5, rtol=1e-5), (
            f"running_std={rs} running_mean={rm} max_err={err}")

    # Case B: D = C*K*K = 144 (not a multiple of 128) exercises lane padding.
    B2, C2, K2 = 8, 16, 3
    x2 = jax.random.normal(kx2, (B2, C2, K2, K2), jnp.float32)
    std_p2 = jax.random.normal(ks2, (C2 * K2 * K2,), jnp.float32) * (GAIN / K2)
    mean_p2 = jax.random.normal(km2, (C2 * K2 * K2,), jnp.float32)
    out2 = jax.block_until_ready(filter_norm_forward(
        x2, std_p2, mean_p2, in_channels=C2, kernel_size=K2,
        running_std=True, running_mean=True, gain=GAIN))
    ref2 = reference_forward(x2, std_p2, mean_p2, in_channels=C2, kernel_size=K2,
                             running_std=True, running_mean=True, gain=GAIN)
    err2 = float(jnp.max(jnp.abs(out2 - ref2)))
    assert jnp.allclose(out2, ref2, atol=1e-5, rtol=1e-5), err2

    # Case C: bf16 I/O smoke test (HBM-bandwidth lever); stats stay f32 in-kernel.
    # bf16 output cannot meet 1e-5 — only for bf16 pipelines; loose check here.
    xb = x.astype(jnp.bfloat16)
    outb = jax.block_until_ready(filter_norm_forward(
        xb, in_channels=C, kernel_size=K,
        running_std=False, running_mean=False, gain=GAIN))
    refb = reference_forward(xb, in_channels=C, kernel_size=K,
                             running_std=False, running_mean=False, gain=GAIN)
    assert outb.dtype == jnp.bfloat16
    errb = float(jnp.max(jnp.abs(outb.astype(jnp.float32) - refb)))
    assert errb < 5e-2, errb

    print("KERNEL_OK")
</pallas_src>

<mosaic_0001>
module attributes {stable_mosaic.version = 11 : i64} {
  func.func @kernel(%arg0: i32, %arg1: memref<16x256xf32, #tpu.memory_space<vmem>>, %arg2: memref<256x16xf32, #tpu.memory_space<vmem>>, %arg3: memref<1x256xf32, #tpu.memory_space<vmem>>, %arg4: memref<1x256xf32, #tpu.memory_space<vmem>>, %arg5: memref<16x256xf32, #tpu.memory_space<vmem>>) attributes {dimension_semantics = [#tpu.dimension_semantics<parallel>], iteration_bounds = array<i64: 1>, scalar_prefetch = 0 : i64, scratch_operands = 0 : i64, tpu.core_type = #tpu.core_type<tc>, window_params = [{transform_indices = @transform_0, window_bounds = array<i64: 16, 256>}, {pipeline_mode = #tpu.pipeline_mode<synchronous>, transform_indices = @transform_1, window_bounds = array<i64: 256, 16>}, {pipeline_mode = #tpu.pipeline_mode<synchronous>, transform_indices = @transform_2, window_bounds = array<i64: 1, 256>}, {pipeline_mode = #tpu.pipeline_mode<synchronous>, transform_indices = @transform_3, window_bounds = array<i64: 1, 256>}, {transform_indices = @transform_4, window_bounds = array<i64: 16, 256>}]} {
    %c0 = arith.constant 0 : index
    %c0_0 = arith.constant 0 : index
    %0 = vector.load %arg1[%c0, %c0_0] : memref<16x256xf32, #tpu.memory_space<vmem>>, vector<16x256xf32>
    %c0_1 = arith.constant 0 : index
    %c0_2 = arith.constant 0 : index
    %1 = vector.load %arg2[%c0_1, %c0_2] : memref<256x16xf32, #tpu.memory_space<vmem>>, vector<256x16xf32>
    %2 = arith.mulf %0, %0 : vector<16x256xf32>
    %3 = tpu.concatenate %0, %2 in 0 : vector<16x256xf32>, vector<16x256xf32> -> vector<32x256xf32>
    %cst = arith.constant dense<0.000000e+00> : vector<32x16xf32>
    %4 = tpu.matmul %3, %1, %cst {dimension_numbers = #tpu.dot_dimension_numbers<[1], [0], [0], [1], [0, 0, 1, 1], [], []>} : vector<32x256xf32>, vector<256x16xf32>, vector<32x16xf32> -> vector<32x16xf32>
    %5 = vector.extract_strided_slice %4 {offsets = [0, 0], sizes = [16, 16], strides = [1, 1]} : vector<32x16xf32> to vector<16x16xf32>
    %6 = vector.extract_strided_slice %4 {offsets = [16, 0], sizes = [16, 16], strides = [1, 1]} : vector<32x16xf32> to vector<16x16xf32>
    %cst_3 = arith.constant 6.250000e-02 : f32
    %7 = vector.broadcast %cst_3 : f32 to vector<16x16xf32>
    %8 = arith.mulf %5, %7 : vector<16x16xf32>
    %9 = arith.mulf %8, %5 : vector<16x16xf32>
    %10 = arith.subf %6, %9 : vector<16x16xf32>
    %cst_4 = arith.constant 0.0666666701 : f32
    %11 = vector.broadcast %cst_4 : f32 to vector<16x16xf32>
    %12 = arith.mulf %10, %11 : vector<16x16xf32>
    %cst_5 = arith.constant 0.000000e+00 : f32
    %13 = vector.broadcast %cst_5 : f32 to vector<16x16xf32>
    %14 = arith.maximumf %12, %13 : vector<16x16xf32>
    %15 = math.sqrt %14 : vector<16x16xf32>
    %cst_6 = arith.constant 1.000000e-10 : f32
    %16 = vector.broadcast %cst_6 : f32 to vector<16x16xf32>
    %17 = arith.addf %15, %16 : vector<16x16xf32>
    %cst_7 = arith.constant 1.000000e+00 : f32
    %18 = vector.broadcast %cst_7 : f32 to vector<16x16xf32>
    %19 = arith.divf %18, %17 : vector<16x16xf32>
    %cst_8 = arith.constant 0.000000e+00 : f32
    %20 = vector.broadcast %cst_8 : f32 to vector<16x16xf32>
    %21 = arith.subf %20, %8 : vector<16x16xf32>
    %22 = arith.mulf %21, %19 : vector<16x16xf32>
    %23 = tpu.concatenate %19, %22 in 0 : vector<16x16xf32>, vector<16x16xf32> -> vector<32x16xf32>
    %cst_9 = arith.constant dense<0.000000e+00> : vector<32x256xf32>
    %24 = tpu.matmul %23, %1, %cst_9 {dimension_numbers = #tpu.dot_dimension_numbers<[1], [1], [0], [0], [0, 0, 1, 0], [], []>} : vector<32x16xf32>, vector<256x16xf32>, vector<32x256xf32> -> vector<32x256xf32>
    %25 = vector.extract_strided_slice %24 {offsets = [0, 0], sizes = [16, 256], strides = [1, 1]} : vector<32x256xf32> to vector<16x256xf32>
    %26 = arith.mulf %0, %25 : vector<16x256xf32>
    %27 = vector.extract_strided_slice %24 {offsets = [16, 0], sizes = [16, 256], strides = [1, 1]} : vector<32x256xf32> to vector<16x256xf32>
    %28 = arith.addf %26, %27 : vector<16x256xf32>
    %c0_10 = arith.constant 0 : index
    %c0_11 = arith.constant 0 : index
    %29 = vector.load %arg3[%c0_10, %c0_11] : memref<1x256xf32, #tpu.memory_space<vmem>>, vector<1x256xf32>
    %30 = vector.broadcast %29 : vector<1x256xf32> to vector<16x256xf32>
    %31 = arith.mulf %28, %30 : vector<16x256xf32>
    %c0_12 = arith.constant 0 : index
    %c0_13 = arith.constant 0 : index
    %32 = vector.load %arg4[%c0_12, %c0_13] : memref<1x256xf32, #tpu.memory_space<vmem>>, vector<1x256xf32>
    %33 = vector.broadcast %32 : vector<1x256xf32> to vector<16x256xf32>
    %34 = arith.addf %31, %33 : vector<16x256xf32>
    %c0_14 = arith.constant 0 : index
    %c0_15 = arith.constant 0 : index
    %35 = vector.load %arg5[%c0_14, %c0_15] : memref<16x256xf32, #tpu.memory_space<vmem>>, vector<16x256xf32>
    tpu.vector_store %arg5[%c0_14, %c0_15], %34 {strides = array<i32>} : memref<16x256xf32, #tpu.memory_space<vmem>>, vector<16x256xf32>,
    return
  }
  func.func @transform_0(%arg0: i32) -> (i32, i32) {
    %c0_i32 = arith.constant 0 : i32
    %c0_i32_0 = arith.constant 0 : i32
    return %arg0, %c0_i32 : i32, i32
  }
  func.func @transform_1(%arg0: i32) -> (i32, i32) {
    %c0_i32 = arith.constant 0 : i32
    %c0_i32_0 = arith.constant 0 : i32
    %c0_i32_1 = arith.constant 0 : i32
    return %c0_i32, %c0_i32_0 : i32, i32
  }
  func.func @transform_2(%arg0: i32) -> (i32, i32) {
    %c0_i32 = arith.constant 0 : i32
    %c0_i32_0 = arith.constant 0 : i32
    %c0_i32_1 = arith.constant 0 : i32
    return %c0_i32, %c0_i32_0 : i32, i32
  }
  func.func @transform_3(%arg0: i32) -> (i32, i32) {
    %c0_i32 = arith.constant 0 : i32
    %c0_i32_0 = arith.constant 0 : i32
    %c0_i32_1 = arith.constant 0 : i32
    return %c0_i32, %c0_i32_0 : i32, i32
  }
  func.func @transform_4(%arg0: i32) -> (i32, i32) {
    %c0_i32 = arith.constant 0 : i32
    %c0_i32_0 = arith.constant 0 : i32
    return %arg0, %c0_i32 : i32, i32
  }
}

</mosaic_0001>

<bundles_post_ra>
// kernel: tpu_custom_call.1
= control target key start
LH: loop header
LB: loop body
LE: loop exit
PB: predicated region body
PF: predicated region fallthrough
CT: control target
= control target key end

     0   :  { %s825_s0 = inlined_call_operand.vmem [shape: f32[16,256], index: 0, kind: input, shape index: {}]   ;;  %s826_s1 = inlined_call_operand.vmem [shape: f32[256,16], index: 1, kind: input, shape index: {}]   ;;  %s827_s2 = inlined_call_operand.vmem [shape: f32[1,256], index: 2, kind: input, shape index: {}]   ;;  %s828_s3 = inlined_call_operand.vmem [shape: f32[1,256], index: 3, kind: input, shape index: {}]   ;;  %s829_s4 = inlined_call_operand.hbm [shape: f32[16,256], index: 4, kind: output, shape index: {}]  }
   0x1   :  { %v511_v0 = vld [vmem:[%s826_s1 + $0x78] sm:$0xff]  ;;  %v521_v2 = vld [vmem:[%s826_s1 + $0x70] sm:$0xff]  ;;  %v533_v4 = vld [vmem:[%s826_s1 + $0x68] sm:$0xff] }
   0x2   :  { %v516_v1 = vld [vmem:[%s826_s1 + $0xf8] sm:$0xff]  ;;  %58 = vmatpush.msra.mxu0 %v511_v0  ;;  %v528_v3 = vld [vmem:[%s826_s1 + $0xf0] sm:$0xff]  ;;  %v538_v5 = vld [vmem:[%s826_s1 + $0xe8] sm:$0xff] }
   0x3   :  { %87 = vmatpush.msra.mxu1 %v516_v1  ;;  %v545_v6 = vld [vmem:[%s826_s1 + $0x60] sm:$0xff]  ;;  %v557_v8 = vld [vmem:[%s826_s1 + $0x58] sm:$0xff]  ;;  %v569_v10 = vld [vmem:[%s826_s1 + $0x50] sm:$0xff] }
   0x4   :  { %59 = vmatpush.msra.mxu0 %v521_v2  ;;  %v550_v7 = vld [vmem:[%s826_s1 + $0xe0] sm:$0xff]  ;;  %v562_v9 = vld [vmem:[%s826_s1 + $0xd8] sm:$0xff]  ;;  %v574_v11 = vld [vmem:[%s826_s1 + $0xd0] sm:$0xff] }
   0x5   :  { %88 = vmatpush.msra.mxu1 %v528_v3  ;;  %v581_v12 = vld [vmem:[%s826_s1 + $0x48] sm:$0xff]  ;;  %v593_v14 = vld [vmem:[%s826_s1 + $0x40] sm:$0xff] }
   0x6   :  { %60 = vmatpush.msra.mxu0 %v533_v4  ;;  %v586_v13 = vld [vmem:[%s826_s1 + $0xc8] sm:$0xff]  ;;  %v598_v15 = vld [vmem:[%s826_s1 + $0xc0] sm:$0xff] }
   0x7   :  { %89 = vmatpush.msra.mxu1 %v538_v5 }
   0x8   :  { %61 = vmatpush.msra.mxu0 %v545_v6 }
   0x9   :  { %90 = vmatpush.msra.mxu1 %v550_v7 }
   0xa   :  { %62 = vmatpush.msra.mxu0 %v557_v8 }
   0xb   :  { %91 = vmatpush.msra.mxu1 %v562_v9 }
   0xc   :  { %63 = vmatpush.msra.mxu0 %v569_v10 }
   0xd   :  { %92 = vmatpush.msra.mxu1 %v574_v11 }
   0xe   :  { %9 = vsyncpa [#allocation3], 0  ;;  %64 = vmatpush.msra.mxu0 %v581_v12  ;;  %v605_v16 = vld [vmem:[%s826_s1 + $0x38] sm:$0xff]  ;;  %v617_v18 = vld [vmem:[%s826_s1 + $0x30] sm:$0xff]  ;;  %vm186_vm0 = vcmask 130048   ;;  %s391_s13 = sshll.u32 %s829_s4, 4  ;;  %s392_s13 = int_to_ptr.hbm [resolvable:$true] %s391_s13 }
   0xf   :  { %93 = vmatpush.msra.mxu1 %v586_v13  ;;  %v610_v17 = vld [vmem:[%s826_s1 + $0xb8] sm:$0xff]  ;;  %v622_v19 = vld [vmem:[%s826_s1 + $0xb0] sm:$0xff]  ;;  %v629_v20 = vld [vmem:[%s826_s1 + $0x28] sm:$0xff]  ;;  %403 = vmatpush.xpose.msk.msra.mxu2 %vm186_vm0, %v511_v0  ;;  %s481_s14 = smov 256   ;;  %s482_s15 = smov 16  }
  0x10   :  { %65 = vmatpush.msra.mxu0 %v593_v14  ;;  %v634_v21 = vld [vmem:[%s826_s1 + $0xa8] sm:$0xff]  ;;  %v641_v22 = vld [vmem:[%s826_s1 + $0x20] sm:$0xff]  ;;  %v653_v24 = vld [vmem:[%s826_s1 + $0x18] sm:$0xff]  ;;  %423 = vmatpush.xpose.msk.msra.mxu3 %vm186_vm0, %v516_v1 }
  0x11   :  { %94 = vmatpush.msra.mxu1 %v598_v15  ;;  %v646_v23 = vld [vmem:[%s826_s1 + $0xa0] sm:$0xff]  ;;  %v658_v25 = vld [vmem:[%s826_s1 + $0x98] sm:$0xff]  ;;  %v665_v26 = vld [vmem:[%s826_s1 + $0x10] sm:$0xff] }
  0x12   :  { %66 = vmatpush.msra.mxu0 %v605_v16  ;;  %v670_v27 = vld [vmem:[%s826_s1 + $0x90] sm:$0xff]  ;;  %v677_v28 = vld [vmem:[%s826_s1 + $0x8] sm:$0xff]  ;;  %v689_v30 = vld [vmem:[%s826_s1] sm:$0xff] }
  0x13   :  { %95 = vmatpush.msra.mxu1 %v610_v17  ;;  %v682_v29 = vld [vmem:[%s826_s1 + $0x88] sm:$0xff]  ;;  %v694_v31 = vld [vmem:[%s826_s1 + $0x80] sm:$0xff]  ;;  %v715_v34 = vld [vmem:[%s825_s0 + $0x10] sm:$0xff]  ;;  %404 = vmatpush.xpose.msk.msra.mxu2 %vm186_vm0, %v521_v2 }
  0x14   :  { %67 = vmatpush.msra.mxu0 %v617_v18  ;;  %v701_v32 = vld [vmem:[%s825_s0] sm:$0xff]  ;;  %v706_v33 = vld [vmem:[%s825_s0 + $0x8] sm:$0xff]  ;;  %v720_v35 = vld [vmem:[%s825_s0 + $0x18] sm:$0xff]  ;;  %v56_v38 = vmul.f32 %v715_v34, %v715_v34  ;;  %424 = vmatpush.xpose.msk.msra.mxu3 %vm186_vm0, %v528_v3 }
  0x15   :  { %96 = vmatpush.msra.mxu1 %v622_v19  ;;  %v54_v36 = vmul.f32 %v701_v32, %v701_v32  ;;  %v55_v37 = vmul.f32 %v706_v33, %v706_v33  ;;  %v57_v39 = vmul.f32 %v720_v35, %v720_v35 }
  0x16   :  { %68 = vmatpush.msra.mxu0 %v629_v20 }
  0x17   :  { %97 = vmatpush.msra.mxu1 %v634_v21  ;;  %405 = vmatpush.xpose.msk.msra.mxu2 %vm186_vm0, %v533_v4 }
  0x18   :  { %69 = vmatpush.msra.mxu0 %v641_v22  ;;  %425 = vmatpush.xpose.msk.msra.mxu3 %vm186_vm0, %v538_v5 }
  0x19   :  { %98 = vmatpush.msra.mxu1 %v646_v23 }
  0x1a   :  { %70 = vmatpush.msra.mxu0 %v653_v24 }
  0x1b   :  { %99 = vmatpush.msra.mxu1 %v658_v25  ;;  %406 = vmatpush.xpose.msk.msra.mxu2 %vm186_vm0, %v545_v6 }
  0x1c   :  { %71 = vmatpush.msra.mxu0 %v665_v26  ;;  %426 = vmatpush.xpose.msk.msra.mxu3 %vm186_vm0, %v550_v7 }
  0x1d   :  { %100 = vmatpush.msra.mxu1 %v670_v27 }
  0x1e   :  { %72 = vmatpush.msra.mxu0 %v677_v28 }
  0x1f   :  { %101 = vmatpush.msra.mxu1 %v682_v29  ;;  %407 = vmatpush.xpose.msk.msra.mxu2 %vm186_vm0, %v557_v8 }
  0x20   :  { %73 = vmatpush.msra.mxu0 %v689_v30  ;;  %427 = vmatpush.xpose.msk.msra.mxu3 %vm186_vm0, %v562_v9 }
  0x21   :  { %102 = vmatpush.msra.mxu1 %v694_v31  ;;  %74 = vmatmul.f32.vlgmr.msra.gmra.mxu0 %v701_v32 }
  0x22   :  { %103 = vmatmul.f32.vlgmr.msra.gmra.mxu1 %v706_v33 }
  0x23   :  { %408 = vmatpush.xpose.msk.msra.mxu2 %vm186_vm0, %v569_v10 }
  0x24   :  { %428 = vmatpush.xpose.msk.msra.mxu3 %vm186_vm0, %v574_v11 }
  0x27   :  { %409 = vmatpush.xpose.msk.msra.mxu2 %vm186_vm0, %v581_v12 }
  0x28   :  { %429 = vmatpush.xpose.msk.msra.mxu3 %vm186_vm0, %v586_v13 }
  0x29   :  { %77 = vmatmul.f32.gmra.mxu0 %v715_v34 }
  0x2a   :  { %106 = vmatmul.f32.gmra.mxu1 %v720_v35 }
  0x2b   :  { %410 = vmatpush.xpose.msk.msra.mxu2 %vm186_vm0, %v593_v14 }
  0x2c   :  { %430 = vmatpush.xpose.msk.msra.mxu3 %vm186_vm0, %v598_v15 }
  0x2f   :  { %411 = vmatpush.xpose.msk.msra.mxu2 %vm186_vm0, %v605_v16 }
  0x30   :  { %431 = vmatpush.xpose.msk.msra.mxu3 %vm186_vm0, %v610_v17 }
  0x31   :  { %80 = vmatmul.f32.gmra.mxu0 %v54_v36 }
  0x32   :  { %109 = vmatmul.f32.gmra.mxu1 %v55_v37 }
  0x33   :  { %412 = vmatpush.xpose.msk.msra.mxu2 %vm186_vm0, %v617_v18 }
  0x34   :  { %432 = vmatpush.xpose.msk.msra.mxu3 %vm186_vm0, %v622_v19 }
  0x37   :  { %413 = vmatpush.xpose.msk.msra.mxu2 %vm186_vm0, %v629_v20 }
  0x38   :  { %433 = vmatpush.xpose.msk.msra.mxu3 %vm186_vm0, %v634_v21 }
  0x39   :  { %83 = vmatmul.f32.gmra.mxu0 %v56_v38 }
  0x3a   :  { %112 = vmatmul.f32.gmra.mxu1 %v57_v39 }
  0x3b   :  { %414 = vmatpush.xpose.msk.msra.mxu2 %vm186_vm0, %v641_v22 }
  0x3c   :  { %434 = vmatpush.xpose.msk.msra.mxu3 %vm186_vm0, %v646_v23 }
  0x3f   :  { %415 = vmatpush.xpose.msk.msra.mxu2 %vm186_vm0, %v653_v24 }
  0x40   :  { %435 = vmatpush.xpose.msk.msra.mxu3 %vm186_vm0, %v658_v25 }
  0x43   :  { %416 = vmatpush.xpose.msk.msra.mxu2 %vm186_vm0, %v665_v26 }
  0x44   :  { %436 = vmatpush.xpose.msk.msra.mxu3 %vm186_vm0, %v670_v27 }
  0x47   :  { %417 = vmatpush.xpose.msk.msra.mxu2 %vm186_vm0, %v677_v28 }
  0x48   :  { %437 = vmatpush.xpose.msk.msra.mxu3 %vm186_vm0, %v682_v29 }
  0x4b   :  { %418 = vmatpush.xpose.msk.msra.mxu2 %vm186_vm0, %v689_v30 }
  0x4c   :  { %438 = vmatpush.xpose.msk.msra.mxu3 %vm186_vm0, %v694_v31 }
  0x9e   :  { %v75_v40 = vpop.f32.mrf.mxu0 }
  0x9f   :  { %v104_v41 = vpop.f32.mrf.mxu1 }
  0xa0   :  { %v105_v44 = vadd.f32 %v104_v41, %v75_v40 }
  0xa2   :  { %v776_v45 = vmul.f32 0.0625, %v105_v44 }
  0xa4   :  { %v118_v48 = vmul.f32 %v776_v45, %v105_v44  ;;  %v182_v44 = vsub.f32 0.0, %v776_v45  ;;  %v361_v45 = vld [vmem:[%s827_s2] sm:$0x3]  ;;  %s480_s2 = smov [#allocation2]  }
  0xa6   :  { %v78_v42 = vpop.f32.mrf.mxu0 }
  0xa7   :  { %v107_v43 = vpop.f32.mrf.mxu1 }
  0xa8   :  { %v108_v49 = vadd.f32 %v107_v43, %v78_v42 }
  0xaa   :  { %v787_v52 = vmul.f32 0.0625, %v108_v49 }
  0xac   :  { %v119_v57 = vmul.f32 %v787_v52, %v108_v49 }
  0xae   :  { %v81_v46 = vpop.f32.mrf.mxu0 }
  0xaf   :  { %v110_v47 = vpop.f32.mrf.mxu1 }
  0xb0   :  { %v111_v50 = vadd.f32 %v110_v47, %v81_v46  ;;  %v183_v47 = vsub.f32 0.0, %v787_v52 }
  0xb2   :  { %v120_v51 = vsub.f32 %v111_v50, %v118_v48 }
  0xb4   :  { %v122_v53 = vmul.f32 0.06666667, %v120_v51 }
  0xb6   :  { %v124_v54 = vmax.f32 %v122_v53, 0.0  ;;  %v84_v55 = vpop.f32.mrf.mxu0 }
  0xb7   :  { %v113_v56 = vpop.f32.mrf.mxu1 }
  0xb8   :  { %446 = vrsqrt.f32 %v124_v54  ;;  %v114_v58 = vadd.f32 %v113_v56, %v84_v55  ;;  %vm133_vm1 = vcmp.eq.f32.partialorder %v124_v54, inf  ;;  %v136_v8 = vand.u32 2147483648, %v124_v54 }
  0xb9   :  { %vm135_vm2 = vcmp.eq.f32.partialorder %v124_v54, 0.0  ;;  %v363_v56 = vperm.slane %v361_v45, 0 }
  0xba   :  { %v121_v59 = vsub.f32 %v114_v58, %v119_v57  ;;  %v364_v57 = vperm.slane %v361_v45, 1 }
  0xbc   :  { %v123_v60 = vmul.f32 0.06666667, %v121_v59 }
  0xbe   :  { %v447_v61 = vpop.eup %446  ;;  %v125_v62 = vmax.f32 %v123_v60, 0.0 }
  0xbf   :  { %v127_v63 = vmul.f32 %v447_v61, %v124_v54 }
  0xc0   :  { %448 = vrsqrt.f32 %v125_v62  ;;  %vm145_vm3 = vcmp.eq.f32.partialorder %v125_v62, inf  ;;  %v148_v16 = vand.u32 2147483648, %v125_v62  ;;  %vm147_vm4 = vcmp.eq.f32.partialorder %v125_v62, 0.0 }
  0xc1   :  { %v128_v0 = vmul.f32 %v447_v61, %v127_v63 }
  0xc3   :  { %v129_v1 = vmul.f32 0.5, %v128_v0 }
  0xc5   :  { %v130_v2 = vsub.f32 1.5, %v129_v1 }
  0xc6   :  { %v449_v3 = vpop.eup %448 }
  0xc7   :  { %v139_v4 = vmul.f32 %v449_v3, %v125_v62  ;;  %v131_v5 = vmul.f32 %v447_v61, %v130_v2 }
  0xc9   :  { %v132_v6 = vmul.f32 %v131_v5, %v124_v54  ;;  %v140_v7 = vmul.f32 %v449_v3, %v139_v4 }
  0xcb   :  { %v134_v9 = vsel %vm133_vm1, %v124_v54, %v132_v6  ;;  %v141_v10 = vmul.f32 0.5, %v140_v7  ;;  %v371_v54 = vld [vmem:[%s828_s3] sm:$0x3]  ;;  %s389_s3 = sshll.u32 %s480_s2, 4  ;;  %s390_s3 = int_to_ptr.vmem [resolvable:$true] %s389_s3 }
  0xcc   :  { %v137_v11 = vsel %vm135_vm2, %v136_v8, %v134_v9  ;;  %v373_v61 = vperm.slane %v371_v54, 0  ;;  %v374_v63 = vperm.slane %v371_v54, 1 }
  0xcd   :  { %v150_v12 = vadd.f32 1e-10, %v137_v11  ;;  %v142_v13 = vsub.f32 1.5, %v141_v10 }
  0xcf   :  { %450 = vrcp.f32 %v150_v12  ;;  %v143_v14 = vmul.f32 %v449_v3, %v142_v13  ;;  %v163_v23 = vand.u32 2147483648, %v150_v12  ;;  %v161_v25 = vand.u32 2147483647, %v150_v12 }
  0xd0   :  { %vm157_vm6 = vweird.f32 %v150_v12 }
  0xd1   :  { %v144_v15 = vmul.f32 %v143_v14, %v125_v62  ;;  %v164_v27 = vor.u32 1.1754944e-38, %v163_v23  ;;  %vm162_vm8 = vcmp.eq.f32.partialorder %v161_v25, 8.507059e+37 }
  0xd3   :  { %v146_v17 = vsel %vm145_vm3, %v125_v62, %v144_v15 }
  0xd4   :  { %v149_v19 = vsel %vm147_vm4, %v148_v16, %v146_v17 }
  0xd5   :  { %v451_v18 = vpop.eup %450  ;;  %v151_v21 = vadd.f32 1e-10, %v149_v19 }
  0xd6   :  { %v153_v20 = vmul.f32 %v451_v18, %v150_v12  ;;  %vm158_vm5 = vweird.f32 %v451_v18 }
  0xd7   :  { %452 = vrcp.f32 %v151_v21  ;;  %vm159_vm7 = vmor %vm157_vm6, %vm158_vm5  ;;  %v178_v37 = vand.u32 2147483648, %v151_v21  ;;  %v176_v39 = vand.u32 2147483647, %v151_v21  ;;  %vm172_vm10 = vweird.f32 %v151_v21 }
  0xd8   :  { %v154_v22 = vsub.f32 1.0, %v153_v20 }
  0xd9   :  { %v179_v41 = vor.u32 1.1754944e-38, %v178_v37  ;;  %vm177_vm12 = vcmp.eq.f32.partialorder %v176_v39, 8.507059e+37 }
  0xda   :  { %v155_v24 = vmul.f32 %v451_v18, %v154_v22 }
  0xdc   :  { %v156_v26 = vadd.f32 %v451_v18, %v155_v24 }
  0xdd   :  { %v453_v28 = vpop.eup %452 }
  0xde   :  { %v160_v29 = vsel %vm159_vm7, %v451_v18, %v156_v26  ;;  %v168_v31 = vmul.f32 %v453_v28, %v151_v21  ;;  %vm173_vm9 = vweird.f32 %v453_v28 }
  0xdf   :  { %v165_v30 = vsel %vm162_vm8, %v164_v27, %v160_v29  ;;  %vm174_vm11 = vmor %vm172_vm10, %vm173_vm9 }
  0xe0   :  { %419 = vmatmul.msk.f32.vlgmr.msra.gmra.mxu2 %vm186_vm0, %v165_v30  ;;  %439 = vmatmul.msk.f32.vlgmr.msra.gmra.mxu3 %vm186_vm0, %v165_v30  ;;  %v169_v36 = vsub.f32 1.0, %v168_v31  ;;  %v184_v46 = vmul.f32 %v182_v44, %v165_v30 }
  0xe2   :  { %v170_v38 = vmul.f32 %v453_v28, %v169_v36 }
  0xe4   :  { %v171_v40 = vadd.f32 %v453_v28, %v170_v38 }
  0xe6   :  { %v175_v42 = vsel %vm174_vm11, %v453_v28, %v171_v40 }
  0xe7   :  { %v180_v43 = vsel %vm177_vm12, %v179_v41, %v175_v42 }
  0xe8   :  { %420 = vmatmul.msk.f32.gmra.mxu2 %vm186_vm0, %v180_v43  ;;  %440 = vmatmul.msk.f32.gmra.mxu3 %vm186_vm0, %v180_v43  ;;  %v185_v48 = vmul.f32 %v183_v47, %v180_v43 }
  0xf0   :  { %421 = vmatmul.msk.f32.gmra.mxu2 %vm186_vm0, %v184_v46  ;;  %441 = vmatmul.msk.f32.gmra.mxu3 %vm186_vm0, %v184_v46 }
  0xf8   :  { %422 = vmatmul.msk.f32.gmra.mxu2 %vm186_vm0, %v185_v48  ;;  %442 = vmatmul.msk.f32.gmra.mxu3 %vm186_vm0, %v185_v48 }
 0x163   :  { %v312_v49 = vpop.f32.mrf.mxu2  ;;  %v341_v50 = vpop.f32.mrf.mxu3 }
 0x164   :  { %v353_v55 = vmul.f32 %v312_v49, %v701_v32  ;;  %v354_v52 = vmul.f32 %v341_v50, %v706_v33 }
 0x16b   :  { %v315_v51 = vpop.f32.mrf.mxu2  ;;  %v344_v53 = vpop.f32.mrf.mxu3 }
 0x16c   :  { %v355_v4 = vmul.f32 %v315_v51, %v715_v34  ;;  %v356_v5 = vmul.f32 %v344_v53, %v720_v35 }
 0x173   :  { %v318_v58 = vpop.f32.mrf.mxu2  ;;  %v347_v59 = vpop.f32.mrf.mxu3 }
 0x174   :  { %v357_v60 = vadd.f32 %v353_v55, %v318_v58  ;;  %v358_v62 = vadd.f32 %v354_v52, %v347_v59 }
 0x176   :  { %v367_v0 = vmul.f32 %v363_v56, %v357_v60  ;;  %v368_v1 = vmul.f32 %v364_v57, %v358_v62 }
 0x178   :  { %v377_v2 = vadd.f32 %v373_v61, %v367_v0  ;;  %v378_v3 = vadd.f32 %v374_v63, %v368_v1 }
 0x17a   :  { %381 = vst [vmem:[#allocation2] sm:$0xff] %v377_v2 }
 0x17b   :  { %382 = vst [vmem:[#allocation2 + $0x8] sm:$0xff] %v378_v3  ;;  %v321_v32 = vpop.f32.mrf.mxu2  ;;  %v350_v33 = vpop.f32.mrf.mxu3 }
 0x17c   :  { %v359_v6 = vadd.f32 %v355_v4, %v321_v32  ;;  %v360_v7 = vadd.f32 %v356_v5, %v350_v33 }
 0x17e   :  { %v369_v8 = vmul.f32 %v363_v56, %v359_v6  ;;  %v370_v9 = vmul.f32 %v364_v57, %v360_v7 }
 0x180   :  { %v379_v10 = vadd.f32 %v373_v61, %v369_v8  ;;  %v380_v11 = vadd.f32 %v374_v63, %v370_v9 }
 0x182   :  { %383 = vst [vmem:[#allocation2 + $0x10] sm:$0xff] %v379_v10 }
 0x183   :  { %384 = vst [vmem:[#allocation2 + $0x18] sm:$0xff] %v380_v11 }
 0x184   :  { %397 = dma.vmem_to_hbm [thread:$0]  %s390_s3, 512, %s392_s13, [#allocation3], %s481_s14, %s481_s14, %s482_s15  }
 0x185   :  { %478 = dma.done.wait [#allocation3], 512  }
 0x186   :  { %479 = vsyncadd [#allocation3], 4294966784 }
 0x187   :  { %402 = vsyncpa [#allocation3], 1 }

</bundles_post_ra>
